<compile_context>
chip_gen: v7x
topology: tpu7x:2x2x1
jax: 0.10.0
libtpu: 0.0.40
codegen_flags: <defaults>
</compile_context>

<pallas_src>
import functools

import jax
import jax.numpy as jnp
from jax.experimental import pallas as pl
from jax.experimental.pallas import tpu as pltpu

_EPS_BN = 1e-5        # nn.BatchNorm1d default eps
_EPS_NORM = 1e-12     # F.normalize default eps

_VMEM_SLACK_BYTES = 4 * 1024 * 1024   # headroom for compiler-internal scratch


@functools.lru_cache(maxsize=1)
def _vmem_limit_bytes():
    """75% of this generation's VMEM capacity (conservative fallback: v7x 64 MiB)."""
    cap = None
    try:
        cap = getattr(pltpu.get_tpu_info(), "vmem_capacity_bytes", None)
    except Exception:
        cap = None
    if not cap:
        cap = 64 * 1024 * 1024
    return int(cap) * 3 // 4


def _pick_hw_tile(B, C, HW, itemsize, vmem_limit):
    """Largest lane tile whose working set fits the generation's VMEM budget."""
    # Fixed-resident cost: ch_sum output block (+safety factor) and slack.
    fixed = _VMEM_SLACK_BYTES + 2 * B * C * 4
    # Per-lane cost: double-buffered x input block + double-buffered sp output tile.
    per_lane = 2 * B * C * itemsize + 2 * B * 4
    max_lanes = (vmem_limit - fixed) // per_lane
    if max_lanes >= HW:
        return HW  # whole HW as a single block (full-extent block is always legal)
    hw_tile = int((max_lanes // 128) * 128)
    if hw_tile < 128:
        # TODO(synk): add a C (sublane) grid axis with a resident (B, hw_tile)
        # partial for the value path to support very large B*C feature maps.
        raise ValueError(
            f"B*C = {B * C} is too large for even a 128-lane block within "
            f"{vmem_limit} bytes of VMEM; C tiling is not implemented yet.")
    return hw_tile


def _afd_teacher_kernel(x_ref, ch_sum_ref, sp_ref, *, HW, hw_tile, blk_per_group):
    """One (B, C, hw_tile) block: accumulate channel sum, emit spatial mean of x^2."""
    h = pl.program_id(1)

    @pl.when(h == 0)
    def _init():
        ch_sum_ref[...] = jnp.zeros_like(ch_sum_ref)

    # Single sweep over the block; upcast in-register (no wrapper upcast copy).
    x = x_ref[...].astype(jnp.float32)                               # (B, C, hw_tile)

    # Mask the padded tail of the globally last block. Lane-only iota; only
    # emitted at trace time when HW is not a multiple of the tile.
    if HW % hw_tile != 0:
        gb = pl.program_id(0) * blk_per_group + h
        lane = jax.lax.broadcasted_iota(jnp.int32, (1, 1, hw_tile), 2)
        x = jnp.where(gb * hw_tile + lane < HW, x, 0.0)

    # Channel sum (lane reduce) and spatial mean of x^2 (sublane reduce), both
    # from the same loaded vregs.
    ch_sum_ref[...] = ch_sum_ref[...] + jnp.sum(x, axis=2)[None, :, :]   # (1, B, C)
    inv_c = 1.0 / x.shape[1]
    sp_ref[...] = (jnp.sum(x * x, axis=1) * inv_c).astype(sp_ref.dtype)  # (B, hw_tile)


def afd_teacher_layer(f_t, w, b, gamma, beta):
    """One teacher layer: f_t is NCHW (B, C, H, W). Returns (query, value)."""
    B, C, H, W = f_t.shape
    HW = H * W
    itemsize = jnp.dtype(f_t.dtype).itemsize

    vmem_limit = _vmem_limit_bytes()
    hw_tile = _pick_hw_tile(B, C, HW, itemsize, vmem_limit)
    n_blk = pl.cdiv(HW, hw_tile)

    # 2-way HW split (per-group ch_sum partials) so v7x's 2 TensorCores can both
    # stream; only when it divides evenly so no fully-OOB input blocks exist.
    n_groups = 2 if (n_blk >= 2 and n_blk % 2 == 0) else 1
    blk_per_group = n_blk // n_groups
    HW_pad = n_blk * hw_tile

    x = f_t.reshape(B, C, HW)                       # native dtype, no upcast copy

    kernel = functools.partial(_afd_teacher_kernel, HW=HW, hw_tile=hw_tile,
                               blk_per_group=blk_per_group)

    cost = pl.CostEstimate(
        flops=3 * B * C * HW,
        transcendentals=0,
        bytes_accessed=B * C * HW * itemsize + B * HW_pad * 4 + n_groups * B * C * 4,
    )

    ch_sum_g, sp_pad = pl.pallas_call(
        kernel,
        out_shape=(
            jax.ShapeDtypeStruct((n_groups, B, C), jnp.float32),
            jax.ShapeDtypeStruct((B, HW_pad), jnp.float32),
        ),
        grid_spec=pltpu.PrefetchScalarGridSpec(
            num_scalar_prefetch=0,
            grid=(n_groups, blk_per_group),
            in_specs=[
                pl.BlockSpec((B, C, hw_tile),
                             lambda g, h, bpg=blk_per_group: (0, 0, g * bpg + h)),
            ],
            out_specs=(
                # per-group channel-sum partial, resident across the HW axis
                pl.BlockSpec((1, B, C), lambda g, h: (g, 0, 0)),
                # lane-dense value tiles, pipelined writeback per block
                pl.BlockSpec((B, hw_tile),
                             lambda g, h, bpg=blk_per_group: (0, g * bpg + h)),
            ),
        ),
        compiler_params=pltpu.CompilerParams(
            dimension_semantics=("parallel", "arbitrary"),
            vmem_limit_bytes=vmem_limit,
        ),
        cost_estimate=cost,
    )(x)

    # ---- tiny finalize in the wrapper (XLA fuses these elementwise ops) ----
    # query = BatchNorm1d(Linear(channel_mean)), training-mode (biased) stats.
    ch_mean = jnp.sum(ch_sum_g, axis=0) * (1.0 / HW)                 # (B, C)
    lin = jnp.dot(ch_mean, jnp.asarray(w, jnp.float32).T,
                  preferred_element_type=jnp.float32) + b.astype(jnp.float32)
    mu = jnp.mean(lin, axis=0, keepdims=True)
    var = jnp.mean((lin - mu) ** 2, axis=0, keepdims=True)           # biased
    q = (lin - mu) * jax.lax.rsqrt(var + _EPS_BN) * gamma + beta

    # value = F.normalize(spatial_mean, dim=1).  Extra (B, HW) read here is
    # negligible vs. the B*C*HW kernel stream, and it keeps the kernel minimal.
    sp = sp_pad[:, :HW] if HW_pad != HW else sp_pad
    norm = jnp.sqrt(jnp.sum(sp * sp, axis=1, keepdims=True))
    v = sp / jnp.maximum(norm, _EPS_NORM)
    return q, v


def linear_transform_teacher(g_t, params):
    """Forward pass of LinearTransformTeacher.

    g_t: list of NCHW arrays (B, C_i, H_i, W_i).
    Returns (query, value): query is (B, n_layers, qk_dim); value is a list of
    (B, H_i*W_i) L2-normalized arrays.
    """
    queries, values = [], []
    for f_t, p in zip(g_t, params):
        q, v = afd_teacher_layer(f_t, p["w"], p["b"], p["gamma"], p["beta"])
        queries.append(q)
        values.append(v)
    query = jnp.stack(queries, axis=1)   # torch.stack(..., dim=1)
    return query, values


def init_params(key, t_shapes, qk_dim):
    """Deterministic init matching nn.Linear default + BatchNorm1d default."""
    params = []
    for i, t_shape in enumerate(t_shapes):
        nin = t_shape[1]
        kw, kb = jax.random.split(jax.random.fold_in(key, i))
        bound = 1.0 / (nin ** 0.5)
        w = jax.random.uniform(kw, (qk_dim, nin), jnp.float32, -bound, bound)
        b = jax.random.uniform(kb, (qk_dim,), jnp.float32, -bound, bound)
        gamma = jnp.ones((qk_dim,), jnp.float32)    # BN weight init
        beta = jnp.zeros((qk_dim,), jnp.float32)    # BN bias init
        params.append(dict(w=w, b=b, gamma=gamma, beta=beta))
    return params


def _reference_layer(f_t, w, b, gamma, beta):
    """Pure-JAX reference of one teacher layer (training-mode BN, no ReLU)."""
    B = f_t.shape[0]
    xf = f_t.astype(jnp.float32)
    ch_mean = xf.mean(axis=(2, 3))
    lin = ch_mean @ w.T + b
    mu = lin.mean(axis=0, keepdims=True)
    var = ((lin - mu) ** 2).mean(axis=0, keepdims=True)
    q = (lin - mu) / jnp.sqrt(var + _EPS_BN) * gamma + beta
    sp = (xf ** 2).mean(axis=1).reshape(B, -1)
    v = sp / jnp.maximum(jnp.sqrt(jnp.sum(sp * sp, axis=1, keepdims=True)), _EPS_NORM)
    return q, v


if __name__ == "__main__":
    key = jax.random.PRNGKey(0)
    qk_dim = 32
    # Two teacher layers with different channel / spatial sizes (NCHW).
    t_shapes = [(2, 4, 16, 16), (2, 8, 8, 8)]

    k_in, k_p = jax.random.split(key)
    g_t = []
    for i, shp in enumerate(t_shapes):
        g_t.append(jax.random.normal(jax.random.fold_in(k_in, i), shp, jnp.float32))

    params = init_params(k_p, t_shapes, qk_dim)

    query, value = linear_transform_teacher(g_t, params)
    query = jax.block_until_ready(query)
    value = [jax.block_until_ready(v) for v in value]

    assert query.shape == (2, len(t_shapes), qk_dim)
    assert value[0].shape == (2, 16 * 16)
    assert value[1].shape == (2, 8 * 8)

    # Correctness check against a pure-JAX reference.
    for i, (f_t, p) in enumerate(zip(g_t, params)):
        q_ref, v_ref = _reference_layer(f_t, p["w"], p["b"], p["gamma"], p["beta"])
        assert bool(jnp.allclose(query[:, i, :], q_ref, rtol=1e-5, atol=1e-5))
        assert bool(jnp.allclose(value[i], v_ref, rtol=1e-5, atol=1e-5))

    print("KERNEL_OK")
</pallas_src>

<mosaic_0001>
module attributes {stable_mosaic.version = 11 : i64} {
  func.func @_afd_teacher_kernel(%arg0: i32, %arg1: i32, %arg2: memref<2x4x256xf32, #tpu.memory_space<vmem>>, %arg3: memref<1x2x4xf32, #tpu.memory_space<vmem>>, %arg4: memref<2x256xf32, #tpu.memory_space<vmem>>) attributes {dimension_semantics = [#tpu.dimension_semantics<parallel>, #tpu.dimension_semantics<arbitrary>], iteration_bounds = array<i64: 1, 1>, scalar_prefetch = 0 : i64, scratch_operands = 0 : i64, tpu.core_type = #tpu.core_type<tc>, window_params = [{transform_indices = @transform_0, window_bounds = array<i64: 2, 4, 256>}, {transform_indices = @transform_1, window_bounds = array<i64: 1, 2, 4>}, {transform_indices = @transform_2, window_bounds = array<i64: 2, 256>}]} {
    %c0_i32 = arith.constant 0 : i32
    %0 = arith.cmpi eq, %arg1, %c0_i32 : i32
    %1 = arith.extui %0 : i1 to i32
    %c0_i32_0 = arith.constant 0 : i32
    %2 = arith.cmpi ne, %1, %c0_i32_0 : i32
    scf.if %2 {
      %cst_13 = arith.constant 0.000000e+00 : f32
      %14 = vector.broadcast %cst_13 : f32 to vector<1x2x4xf32>
      %c0_14 = arith.constant 0 : index
      %c0_15 = arith.constant 0 : index
      %c0_16 = arith.constant 0 : index
      %15 = vector.load %arg3[%c0_14, %c0_15, %c0_16] : memref<1x2x4xf32, #tpu.memory_space<vmem>>, vector<1x2x4xf32>
      tpu.vector_store %arg3[%c0_14, %c0_15, %c0_16], %14 {strides = array<i32>} : memref<1x2x4xf32, #tpu.memory_space<vmem>>, vector<1x2x4xf32>,
    } else {
    }
    %c0 = arith.constant 0 : index
    %c0_1 = arith.constant 0 : index
    %c0_2 = arith.constant 0 : index
    %3 = vector.load %arg2[%c0, %c0_1, %c0_2] : memref<2x4x256xf32, #tpu.memory_space<vmem>>, vector<2x4x256xf32>
    %c0_3 = arith.constant 0 : index
    %c0_4 = arith.constant 0 : index
    %c0_5 = arith.constant 0 : index
    %4 = vector.load %arg3[%c0_3, %c0_4, %c0_5] : memref<1x2x4xf32, #tpu.memory_space<vmem>>, vector<1x2x4xf32>
    %cst = arith.constant dense<0.000000e+00> : vector<2x4xf32>
    %5 = vector.multi_reduction <add>, %3, %cst [2] : vector<2x4x256xf32> to vector<2x4xf32>
    %6 = vector.shape_cast %5 : vector<2x4xf32> to vector<1x2x4xf32>
    %7 = arith.addf %4, %6 : vector<1x2x4xf32>
    %c0_6 = arith.constant 0 : index
    %c0_7 = arith.constant 0 : index
    %c0_8 = arith.constant 0 : index
    %8 = vector.load %arg3[%c0_6, %c0_7, %c0_8] : memref<1x2x4xf32, #tpu.memory_space<vmem>>, vector<1x2x4xf32>
    tpu.vector_store %arg3[%c0_6, %c0_7, %c0_8], %7 {strides = array<i32>} : memref<1x2x4xf32, #tpu.memory_space<vmem>>, vector<1x2x4xf32>,
    %9 = arith.mulf %3, %3 : vector<2x4x256xf32>
    %cst_9 = arith.constant dense<0.000000e+00> : vector<2x256xf32>
    %10 = vector.multi_reduction <add>, %9, %cst_9 [1] : vector<2x4x256xf32> to vector<2x256xf32>
    %cst_10 = arith.constant 2.500000e-01 : f32
    %11 = vector.broadcast %cst_10 : f32 to vector<2x256xf32>
    %12 = arith.mulf %10, %11 : vector<2x256xf32>
    %c0_11 = arith.constant 0 : index
    %c0_12 = arith.constant 0 : index
    %13 = vector.load %arg4[%c0_11, %c0_12] : memref<2x256xf32, #tpu.memory_space<vmem>>, vector<2x256xf32>
    tpu.vector_store %arg4[%c0_11, %c0_12], %12 {strides = array<i32>} : memref<2x256xf32, #tpu.memory_space<vmem>>, vector<2x256xf32>,
    return
  }
  func.func @transform_0(%arg0: i32, %arg1: i32) -> (i32, i32, i32) {
    %c1_i32 = arith.constant 1 : i32
    %0 = arith.muli %arg0, %c1_i32 : i32
    %1 = arith.addi %0, %arg1 : i32
    %c0_i32 = arith.constant 0 : i32
    %c0_i32_0 = arith.constant 0 : i32
    %c0_i32_1 = arith.constant 0 : i32
    return %c0_i32, %c0_i32_0, %1 : i32, i32, i32
  }
  func.func @transform_1(%arg0: i32, %arg1: i32) -> (i32, i32, i32) {
    %c0_i32 = arith.constant 0 : i32
    %c0_i32_0 = arith.constant 0 : i32
    %c0_i32_1 = arith.constant 0 : i32
    return %arg0, %c0_i32, %c0_i32_0 : i32, i32, i32
  }
  func.func @transform_2(%arg0: i32, %arg1: i32) -> (i32, i32) {
    %c1_i32 = arith.constant 1 : i32
    %0 = arith.muli %arg0, %c1_i32 : i32
    %1 = arith.addi %0, %arg1 : i32
    %c0_i32 = arith.constant 0 : i32
    %c0_i32_0 = arith.constant 0 : i32
    return %c0_i32, %1 : i32, i32
  }
}

</mosaic_0001>

<bundles_post_ra>
// kernel: tpu_custom_call.1
= control target key start
LH: loop header
LB: loop body
LE: loop exit
PB: predicated region body
PF: predicated region fallthrough
CT: control target
= control target key end

     0   :  { %8 = vsyncpa [#allocation3], 0  ;;  %s340_s0 = inlined_call_operand.hbm [shape: f32[2,4,256], index: 0, kind: input, shape index: {}]   ;;  %s341_s1 = inlined_call_operand.hbm [shape: f32[1,2,4], index: 1, kind: output, shape index: {0}]   ;;  %s342_s2 = inlined_call_operand.hbm [shape: f32[2,256], index: 2, kind: output, shape index: {1}]  }
   0x1   :  { %9 = vsyncpa [#allocation4], 0 }
   0x2   :  { %10 = vsyncpa [#allocation7], 0  ;;  %s266_s9 = smov [#allocation2]   ;;  %s194_s13 = scalar_lea.hbm %s340_s0, 256 }
   0x3   :  { %s20_s10 = sshll.u32 %s266_s9, 4  ;;  %p195_p0 = scmp.ne.s32.totalorder %s340_s0, %s194_s13  ;;  %s21_s10 = int_to_ptr.vmem [resolvable:$true] %s20_s10 }
   0x4   :  { %p198_p1 = scmp.lt.u32.totalorder %s194_s13, %s340_s0 }
   0x6   :  { %p200_p2 = pnand %p198_p1, %p195_p0 }
   0x8   :  { %203 = shalt.err (!%p200_p2)
}
   0x9   :  { %s204_s18 = scalar_lea.vmem %s21_s10, 256  ;;  %p209_p4 = scmp.lt.s32.totalorder %s21_s10, %s21_s10 }
   0xa   :  { %p205_p3 = scmp.ne.s32.totalorder %s21_s10, %s204_s18  ;;  %p210_p5 = scmp.lt.s32.totalorder %s204_s18, %s204_s18 }
   0xc   :  { %p211_p6 = por %p210_p5, %p209_p4 }
   0xe   :  { %p212_p7 = pnand %p211_p6, %p205_p3 }
  0x10   :  { %215 = shalt.err (!%p212_p7)
}
  0x11   :  { %s267_s19 = smov 128   ;;  %s268_s20 = smov 8  }
  0x12   :  { %26 = dma.hbm_to_vmem [thread:$0]  %s340_s0, 256, %s21_s10, [#allocation3], %s267_s19, %s267_s19, %s268_s20  }
  0x13   :  { %260 = dma.done.wait [#allocation3], 256  }
  0x14   :  { %261 = vsyncadd [#allocation3], 4294967040  ;;  %vm38_vm0 = vcmask 25600   ;;  %v62_v0 = vlaneseq  ;;  %v269_v1 = vmov 0.0   ;;  %vm49_vm1 = vcmask 1043456   ;;  %v40_v5 = vld [vmem:[#allocation2] sm:$0xff] }
  0x15   :  { %39 = vst.msk [vmem:[#allocation5] sm:$0x3] %vm38_vm0, %v269_v1  ;;  %v41_v6 = vld [vmem:[#allocation2 + $0x8] sm:$0xff]  ;;  %v45_v7 = vcombine.high %v40_v5, %v40_v5  ;;  %v50_v8 = vsel %vm49_vm1, %v40_v5, 0.0  ;;  %v78_v9 = vmul.f32 %v40_v5, %v40_v5  ;;  %v270_v36 = vmov 1983009808  }
  0x16   :  { %v63_v2 = vand.u32 127, %v62_v0  ;;  %v65_v3 = vshrl.u32 %v62_v0, 7  ;;  %v46_v10 = vcombine.high %v41_v6, %v41_v6  ;;  %v55_v11 = vsel %vm49_vm1, %v41_v6, 0.0  ;;  %s271_s0 = smov [#allocation6]  }
  0x17   :  { %v79_v12 = vmul.f32 %v41_v6, %v41_v6  ;;  %v51_v13 = vsel %vm49_vm1, %v45_v7, 0.0  ;;  %v82_v14 = vcombine.high %v78_v9, %v78_v9  ;;  %v86_v15 = vsel %vm49_vm1, %v78_v9, 0.0  ;;  %s172_s23 = sshll.u32 %s271_s0, 4  ;;  %s173_s23 = int_to_ptr.vmem [resolvable:$true] %s172_s23 }
  0x18   :  { %v301_v4 = vsub.s32 %v63_v2, %v65_v3  ;;  %v56_v16 = vsel %vm49_vm1, %v46_v10, 0.0  ;;  %v52_v17 = vadd.f32 %v51_v13, %v50_v8  ;;  %v87_v18 = vrot.slane %v86_v15, 4  ;;  %s216_s24 = scalar_lea.vmem %s173_s23, 64  ;;  %p221_p9 = scmp.lt.s32.totalorder %s173_s23, %s173_s23 }
  0x19   :  { %v83_v19 = vcombine.high %v79_v12, %v79_v12  ;;  %v93_v20 = vsel %vm49_vm1, %v82_v14, 0.0  ;;  %v57_v21 = vadd.f32 %v56_v16, %v55_v11  ;;  %v100_v22 = vsel %vm49_vm1, %v79_v12, 0.0  ;;  %p217_p8 = scmp.ne.s32.totalorder %s173_s23, %s216_s24  ;;  %p222_p10 = scmp.lt.s32.totalorder %s216_s24, %s216_s24 }
  0x1a   :  { %v88_v23 = vadd.f32 %v87_v18, %v86_v15  ;;  %v94_v24 = vrot.slane %v93_v20, 4  ;;  %53 = vadd.xlane.f32.xlu0 %v52_v17  ;;  %v101_v25 = vrot.slane %v100_v22, 4  ;;  %v124_v37 = vunpack.c.l.s4 %v270_v36 }
  0x1b   :  { %v107_v26 = vsel %vm49_vm1, %v83_v19, 0.0  ;;  %vm72_vm2 = vcmask 1041409   ;;  %vm144_vm3 = vcmask 1043459   ;;  %vm146_vm4 = vcmask 1045509   ;;  %p223_p11 = por %p222_p10, %p221_p9 }
  0x1c   :  { %v108_v27 = vrot.slane %v107_v26, 4  ;;  %v89_v28 = vrot.slane %v88_v23, 2  ;;  %v95_v29 = vadd.f32 %v94_v24, %v93_v20  ;;  %v102_v30 = vadd.f32 %v101_v25, %v100_v22 }
  0x1d   :  { %v125_v46 = vunpack.c.0.s8 %v124_v37  ;;  %vm148_vm5 = vcmask 1047559   ;;  %p224_p12 = pnand %p223_p11, %p217_p8 }
  0x1e   :  { %v109_v31 = vadd.f32 %v108_v27, %v107_v26  ;;  %v90_v32 = vadd.f32 %v89_v28, %v88_v23  ;;  %v96_v33 = vrot.slane %v95_v29, 2  ;;  %v103_v34 = vrot.slane %v102_v30, 2  ;;  %58 = vadd.xlane.f32.xlu0 %v57_v21 }
  0x1f   :  { %v128_v54 = vsub.s32 %v125_v46, %v65_v3 }
  0x20   :  { %v110_v35 = vrot.slane %v109_v31, 2  ;;  %v91_v38 = vrot.slane %v90_v32, 1  ;;  %v97_v39 = vadd.f32 %v96_v33, %v95_v29  ;;  %v104_v40 = vadd.f32 %v103_v34, %v102_v30 }
  0x22   :  { %v111_v41 = vadd.f32 %v110_v35, %v109_v31  ;;  %v92_v42 = vadd.f32 %v91_v38, %v90_v32  ;;  %v98_v43 = vrot.slane %v97_v39, 1  ;;  %v105_v44 = vrot.slane %v104_v40, 1 }
  0x24   :  { %v112_v45 = vrot.slane %v111_v41, 1  ;;  %v99_v47 = vadd.f32 %v98_v43, %v97_v39  ;;  %v106_v48 = vadd.f32 %v105_v44, %v104_v40  ;;  %v114_v49 = vmul.f32 0.25, %v92_v42 }
  0x26   :  { %v113_v50 = vadd.f32 %v112_v45, %v111_v41  ;;  %v115_v51 = vmul.f32 0.25, %v99_v47  ;;  %v116_v52 = vmul.f32 0.25, %v106_v48 }
  0x28   :  { %v117_v53 = vmul.f32 0.25, %v113_v50  ;;  %v122_v55 = vcombine.low %v114_v49, %v115_v51 }
  0x2a   :  { %v130_v56 = vcombine.low %v116_v52, %v117_v53  ;;  %v129_v57 = vrot.slane %v122_v55, %v128_v54 }
  0x2c   :  { %v137_v58 = vrot.slane %v130_v56, %v128_v54 }
  0x2e   :  { %v142_v59 = vrot.slane %v137_v58, 7 }
  0x30   :  { %v143_v60 = vsel %vm72_vm2, %v142_v59, %v129_v57 }
  0x31   :  { %v145_v61 = vsel %vm144_vm3, %v142_v59, %v143_v60 }
  0x32   :  { %v147_v62 = vsel %vm146_vm4, %v142_v59, %v145_v61 }
  0x33   :  { %v149_v63 = vsel %vm148_vm5, %v142_v59, %v147_v62 }
  0x34   :  { %151 = vst [vmem:[#allocation6] sm:$0xf] %v149_v63 }
  0x35   :  { %227 = shalt.err (!%p224_p12)
}
  0x36   :  { %s228_s27 = scalar_lea.hbm %s342_s2, 64 }
  0x37   :  { %p229_p13 = scmp.ne.s32.totalorder %s342_s2, %s228_s27  ;;  %p232_p0 = scmp.lt.u32.totalorder %s228_s27, %s342_s2 }
  0x39   :  { %p234_p1 = pnand %p232_p0, %p229_p13 }
  0x3b   :  { %237 = shalt.err (!%p234_p1)
}
  0x3c   :  { %175 = dma.vmem_to_hbm [thread:$0]  %s173_s23, 64, %s342_s2, [#allocation7]   ;;  %v42_v3 = vld [vmem:[#allocation5] sm:$0x3] }
  0x3d   :  { %s272_s6 = smov [#allocation5]  }
  0x3e   :  { %s158_s7 = sshll.u32 %s272_s6, 4  ;;  %s159_s7 = int_to_ptr.vmem [resolvable:$true] %s158_s7 }
  0x3f   :  { %s238_s8 = scalar_lea.vmem %s159_s7, 32  ;;  %p243_p3 = scmp.lt.s32.totalorder %s159_s7, %s159_s7 }
  0x40   :  { %p239_p2 = scmp.ne.s32.totalorder %s159_s7, %s238_s8  ;;  %p244_p4 = scmp.lt.s32.totalorder %s238_s8, %s238_s8 }
  0x42   :  { %p245_p5 = por %p244_p4, %p243_p3 }
  0x44   :  { %p246_p6 = pnand %p245_p5, %p239_p2 }
  0xa7   :  { %v54_v0 = vpop.xlane.xlu0 %53 }
  0xa8   :  { %v67_v2 = vrot.slane %v54_v0, %v301_v4 }
  0xab   :  { %v59_v1 = vpop.xlane.xlu0 %58 }
  0xac   :  { %v71_v5 = vrot.slane %v59_v1, %v301_v4 }
  0xae   :  { %v73_v6 = vsel %vm72_vm2, %v71_v5, %v67_v2 }
  0xaf   :  { %v75_v7 = vadd.f32 %v73_v6, %v42_v3 }
  0xb1   :  { %77 = vst.msk [vmem:[#allocation5] sm:$0x3] %vm38_vm0, %v75_v7 }
  0xb2   :  { %249 = shalt.err (!%p246_p6)
}
  0xb3   :  { %s250_s10 = scalar_lea.hbm %s341_s1, 32 }
  0xb4   :  { %p251_p7 = scmp.ne.s32.totalorder %s341_s1, %s250_s10  ;;  %p254_p8 = scmp.lt.u32.totalorder %s250_s10, %s341_s1 }
  0xb6   :  { %p256_p9 = pnand %p254_p8, %p251_p7 }
  0xb8   :  { %259 = shalt.err (!%p256_p9)
}
  0xb9   :  { %161 = dma.vmem_to_hbm [thread:$0]  %s159_s7, 32, %s341_s1, [#allocation4]  }
  0xba   :  { %262 = dma.done.wait [#allocation4], 32  }
  0xbb   :  { %263 = vsyncadd [#allocation4], 4294967264 }
  0xbc   :  { %264 = dma.done.wait [#allocation7], 64  }
  0xbd   :  { %265 = vsyncadd [#allocation7], 4294967232 }
  0xbe   :  { %182 = vsyncpa [#allocation3], 1 }
  0xbf   :  { %183 = vsyncpa [#allocation4], 1 }
  0xc0   :  { %184 = vsyncpa [#allocation7], 1 }

</bundles_post_ra>
